<compile_context>
chip_gen: v7x
topology: tpu7x:2x2x1
jax: 0.10.0
libtpu: 0.0.40
codegen_flags: <defaults>
</compile_context>

<pallas_src>
import functools

import jax
import jax.numpy as jnp
from jax.experimental import pallas as pl
from jax.experimental.pallas import tpu as pltpu


def gru_cell_kernel(x_ref, h_ref, wi_ref, wh_ref, bh_ref, hnew_ref):
    """One GRU step on a (tile_b, ...) batch tile.

    x_ref  : (TB, I)      input tile
    h_ref  : (TB, H)      previous hidden tile
    wi_ref : (I, 3H)      fused, pre-transposed input weights  [r | z | n]
    wh_ref : (H, 3H)      fused, pre-transposed hidden weights [r | z | n]
    bh_ref : (1, 3H)      fused hidden biases                  [r | z | n]
    hnew_ref : (TB, H)    output tile
    """
    x = x_ref[...]                      # (TB, I)
    h_prev = h_ref[...]                 # (TB, H)
    H = h_prev.shape[-1]

    # Two fused matmuls instead of six per-gate GEMMs.
    gi = jnp.dot(x, wi_ref[...], preferred_element_type=jnp.float32)          # (TB, 3H)
    gh = (jnp.dot(h_prev, wh_ref[...], preferred_element_type=jnp.float32)
          + bh_ref[...])                                                       # (TB, 3H)

    # Gate slices (lane-aligned whenever H is a multiple of 128).
    i_r, i_z, i_n = gi[:, :H], gi[:, H:2 * H], gi[:, 2 * H:]
    h_r, h_z, h_n = gh[:, :H], gh[:, H:2 * H], gh[:, 2 * H:]

    r = jax.nn.sigmoid(i_r + h_r)
    z = jax.nn.sigmoid(i_z + h_z)
    g = jnp.tanh(i_n + r * h_n)         # hidden-side bias participates (matches MyGRUCell)
    hnew_ref[...] = (1.0 - z) * g + z * h_prev


def _pick_batch_tile(batch: int) -> int:
    """Largest batch tile that satisfies the (8, 128) sublane rule."""
    if batch % 8 != 0:
        return batch                    # block == full dim is always legal
    tile = min(batch, 256)
    while batch % tile != 0:
        tile //= 2
    return max(tile, 8)


@functools.partial(jax.jit, static_argnames=())
def gru_cell(x, h_prev, params):
    """Pallas-backed forward of MyGRUCell.  Returns h_new: (B, H)."""
    B, I = x.shape
    H = h_prev.shape[1]

    # ---- host-side weight repacking (done once, outside the kernel) ----
    # Stack per-gate weights along the output dim and transpose to (in, out)
    # so the kernel issues plain row-major matmuls with no slicing/transpose.
    wi_t = jnp.concatenate(
        [params["w_ir"], params["w_iz"], params["w_in"]], axis=0).T            # (I, 3H)
    wh_t = jnp.concatenate(
        [params["w_hr"], params["w_hz"], params["w_hn"]], axis=0).T            # (H, 3H)
    bh = jnp.concatenate(
        [params["b_hr"], params["b_hz"], params["b_hn"]], axis=1)              # (1, 3H)

    tile_b = _pick_batch_tile(B)
    grid = (pl.cdiv(B, tile_b),)

    cost = pl.CostEstimate(
        flops=2 * B * (I + H) * 3 * H + 10 * B * H,
        transcendentals=3 * B * H,                       # 2x sigmoid + 1x tanh
        bytes_accessed=4 * (B * I + 2 * B * H + I * 3 * H + H * 3 * H + 3 * H),
    )

    return pl.pallas_call(
        gru_cell_kernel,
        out_shape=jax.ShapeDtypeStruct((B, H), jnp.float32),
        grid=grid,
        in_specs=[
            pl.BlockSpec((tile_b, I), lambda i: (i, 0)),        # x tile
            pl.BlockSpec((tile_b, H), lambda i: (i, 0)),        # h_prev tile
            pl.BlockSpec((I, 3 * H), lambda i: (0, 0)),         # fused input weights
            pl.BlockSpec((H, 3 * H), lambda i: (0, 0)),         # fused hidden weights
            pl.BlockSpec((1, 3 * H), lambda i: (0, 0)),         # fused hidden biases
        ],
        out_specs=pl.BlockSpec((tile_b, H), lambda i: (i, 0)),
        compiler_params=pltpu.CompilerParams(
            dimension_semantics=("parallel",),           # shards batch tiles across TCs on v7x
        ),
        cost_estimate=cost,
    )(x, h_prev, wi_t, wh_t, bh)


def reference(x, h_prev, p):
    """Pure-JAX reference mirroring the PyTorch MyGRUCell.forward."""
    r = jax.nn.sigmoid(x @ p["w_ir"].T + h_prev @ p["w_hr"].T + p["b_hr"])
    z = jax.nn.sigmoid(x @ p["w_iz"].T + h_prev @ p["w_hz"].T + p["b_hz"])
    g = jnp.tanh(x @ p["w_in"].T + r * (h_prev @ p["w_hn"].T + p["b_hn"]))
    return (1.0 - z) * g + z * h_prev


def make_params(key, input_size, hidden_size):
    I, H = input_size, hidden_size
    keys = jax.random.split(key, 9)
    n = lambda k, s: (0.1 * jax.random.normal(k, s)).astype(jnp.float32)
    return {
        # PyTorch nn.Linear convention: weight is (out_features, in_features).
        "w_ir": n(keys[0], (H, I)),
        "w_iz": n(keys[1], (H, I)),
        "w_in": n(keys[2], (H, I)),
        "w_hr": n(keys[3], (H, H)),
        "w_hz": n(keys[4], (H, H)),
        "w_hn": n(keys[5], (H, H)),
        "b_hr": n(keys[6], (1, H)),
        "b_hz": n(keys[7], (1, H)),
        "b_hn": n(keys[8], (1, H)),
    }


if __name__ == "__main__":
    B, I, H = 2, 16, 32
    key = jax.random.PRNGKey(0)
    k_param, k_x, k_h = jax.random.split(key, 3)

    params = make_params(k_param, I, H)
    x = (0.1 * jax.random.normal(k_x, (B, I))).astype(jnp.float32)
    h_prev = (0.1 * jax.random.normal(k_h, (B, H))).astype(jnp.float32)

    h_new = jax.block_until_ready(gru_cell(x, h_prev, params))

    ref_h = reference(x, h_prev, params)
    assert h_new.shape == (B, H)
    assert jnp.allclose(h_new, ref_h, atol=1e-5, rtol=1e-5)

    print("KERNEL_OK")
</pallas_src>

<mosaic_0001>
module attributes {stable_mosaic.version = 11 : i64} {
  func.func @gru_cell_kernel(%arg0: i32, %arg1: memref<2x16xf32, #tpu.memory_space<vmem>>, %arg2: memref<2x32xf32, #tpu.memory_space<vmem>>, %arg3: memref<16x96xf32, #tpu.memory_space<vmem>>, %arg4: memref<32x96xf32, #tpu.memory_space<vmem>>, %arg5: memref<1x96xf32, #tpu.memory_space<vmem>>, %arg6: memref<2x32xf32, #tpu.memory_space<vmem>>) attributes {dimension_semantics = [#tpu.dimension_semantics<parallel>], iteration_bounds = array<i64: 1>, scalar_prefetch = 0 : i64, scratch_operands = 0 : i64, tpu.core_type = #tpu.core_type<tc>, window_params = [{transform_indices = @transform_0, window_bounds = array<i64: 2, 16>}, {transform_indices = @transform_1, window_bounds = array<i64: 2, 32>}, {pipeline_mode = #tpu.pipeline_mode<synchronous>, transform_indices = @transform_2, window_bounds = array<i64: 16, 96>}, {pipeline_mode = #tpu.pipeline_mode<synchronous>, transform_indices = @transform_3, window_bounds = array<i64: 32, 96>}, {pipeline_mode = #tpu.pipeline_mode<synchronous>, transform_indices = @transform_4, window_bounds = array<i64: 1, 96>}, {transform_indices = @transform_5, window_bounds = array<i64: 2, 32>}]} {
    %c0 = arith.constant 0 : index
    %c0_0 = arith.constant 0 : index
    %0 = vector.load %arg1[%c0, %c0_0] : memref<2x16xf32, #tpu.memory_space<vmem>>, vector<2x16xf32>
    %c0_1 = arith.constant 0 : index
    %c0_2 = arith.constant 0 : index
    %1 = vector.load %arg2[%c0_1, %c0_2] : memref<2x32xf32, #tpu.memory_space<vmem>>, vector<2x32xf32>
    %c0_3 = arith.constant 0 : index
    %c0_4 = arith.constant 0 : index
    %2 = vector.load %arg3[%c0_3, %c0_4] : memref<16x96xf32, #tpu.memory_space<vmem>>, vector<16x96xf32>
    %cst = arith.constant dense<0.000000e+00> : vector<2x96xf32>
    %3 = tpu.matmul %0, %2, %cst {dimension_numbers = #tpu.dot_dimension_numbers<[1], [0], [0], [1], [0, 0, 1, 1], [], []>} : vector<2x16xf32>, vector<16x96xf32>, vector<2x96xf32> -> vector<2x96xf32>
    %c0_5 = arith.constant 0 : index
    %c0_6 = arith.constant 0 : index
    %4 = vector.load %arg4[%c0_5, %c0_6] : memref<32x96xf32, #tpu.memory_space<vmem>>, vector<32x96xf32>
    %cst_7 = arith.constant dense<0.000000e+00> : vector<2x96xf32>
    %5 = tpu.matmul %1, %4, %cst_7 {dimension_numbers = #tpu.dot_dimension_numbers<[1], [0], [0], [1], [0, 0, 1, 1], [], []>} : vector<2x32xf32>, vector<32x96xf32>, vector<2x96xf32> -> vector<2x96xf32>
    %c0_8 = arith.constant 0 : index
    %c0_9 = arith.constant 0 : index
    %6 = vector.load %arg5[%c0_8, %c0_9] : memref<1x96xf32, #tpu.memory_space<vmem>>, vector<1x96xf32>
    %7 = vector.broadcast %6 : vector<1x96xf32> to vector<2x96xf32>
    %8 = arith.addf %5, %7 : vector<2x96xf32>
    %9 = vector.extract_strided_slice %3 {offsets = [0, 0], sizes = [2, 32], strides = [1, 1]} : vector<2x96xf32> to vector<2x32xf32>
    %10 = vector.extract_strided_slice %3 {offsets = [0, 32], sizes = [2, 32], strides = [1, 1]} : vector<2x96xf32> to vector<2x32xf32>
    %11 = vector.extract_strided_slice %3 {offsets = [0, 64], sizes = [2, 32], strides = [1, 1]} : vector<2x96xf32> to vector<2x32xf32>
    %12 = vector.extract_strided_slice %8 {offsets = [0, 0], sizes = [2, 32], strides = [1, 1]} : vector<2x96xf32> to vector<2x32xf32>
    %13 = vector.extract_strided_slice %8 {offsets = [0, 32], sizes = [2, 32], strides = [1, 1]} : vector<2x96xf32> to vector<2x32xf32>
    %14 = vector.extract_strided_slice %8 {offsets = [0, 64], sizes = [2, 32], strides = [1, 1]} : vector<2x96xf32> to vector<2x32xf32>
    %15 = arith.addf %9, %12 : vector<2x32xf32>
    %16 = arith.negf %15 : vector<2x32xf32>
    %17 = math.exp %16 : vector<2x32xf32>
    %cst_10 = arith.constant 1.000000e+00 : f32
    %18 = vector.broadcast %cst_10 : f32 to vector<2x32xf32>
    %19 = arith.addf %18, %17 : vector<2x32xf32>
    %20 = arith.divf %18, %19 : vector<2x32xf32>
    %21 = arith.addf %10, %13 : vector<2x32xf32>
    %22 = arith.negf %21 : vector<2x32xf32>
    %23 = math.exp %22 : vector<2x32xf32>
    %cst_11 = arith.constant 1.000000e+00 : f32
    %24 = vector.broadcast %cst_11 : f32 to vector<2x32xf32>
    %25 = arith.addf %24, %23 : vector<2x32xf32>
    %26 = arith.divf %24, %25 : vector<2x32xf32>
    %27 = arith.mulf %20, %14 : vector<2x32xf32>
    %28 = arith.addf %11, %27 : vector<2x32xf32>
    %29 = math.tanh %28 : vector<2x32xf32>
    %cst_12 = arith.constant 1.000000e+00 : f32
    %30 = vector.broadcast %cst_12 : f32 to vector<2x32xf32>
    %31 = arith.subf %30, %26 : vector<2x32xf32>
    %32 = arith.mulf %31, %29 : vector<2x32xf32>
    %33 = arith.mulf %26, %1 : vector<2x32xf32>
    %34 = arith.addf %32, %33 : vector<2x32xf32>
    %c0_13 = arith.constant 0 : index
    %c0_14 = arith.constant 0 : index
    %35 = vector.load %arg6[%c0_13, %c0_14] : memref<2x32xf32, #tpu.memory_space<vmem>>, vector<2x32xf32>
    tpu.vector_store %arg6[%c0_13, %c0_14], %34 {strides = array<i32>} : memref<2x32xf32, #tpu.memory_space<vmem>>, vector<2x32xf32>,
    return
  }
  func.func @transform_0(%arg0: i32) -> (i32, i32) {
    %c0_i32 = arith.constant 0 : i32
    %c0_i32_0 = arith.constant 0 : i32
    return %arg0, %c0_i32 : i32, i32
  }
  func.func @transform_1(%arg0: i32) -> (i32, i32) {
    %c0_i32 = arith.constant 0 : i32
    %c0_i32_0 = arith.constant 0 : i32
    return %arg0, %c0_i32 : i32, i32
  }
  func.func @transform_2(%arg0: i32) -> (i32, i32) {
    %c0_i32 = arith.constant 0 : i32
    %c0_i32_0 = arith.constant 0 : i32
    %c0_i32_1 = arith.constant 0 : i32
    return %c0_i32, %c0_i32_0 : i32, i32
  }
  func.func @transform_3(%arg0: i32) -> (i32, i32) {
    %c0_i32 = arith.constant 0 : i32
    %c0_i32_0 = arith.constant 0 : i32
    %c0_i32_1 = arith.constant 0 : i32
    return %c0_i32, %c0_i32_0 : i32, i32
  }
  func.func @transform_4(%arg0: i32) -> (i32, i32) {
    %c0_i32 = arith.constant 0 : i32
    %c0_i32_0 = arith.constant 0 : i32
    %c0_i32_1 = arith.constant 0 : i32
    return %c0_i32, %c0_i32_0 : i32, i32
  }
  func.func @transform_5(%arg0: i32) -> (i32, i32) {
    %c0_i32 = arith.constant 0 : i32
    %c0_i32_0 = arith.constant 0 : i32
    return %arg0, %c0_i32 : i32, i32
  }
}

</mosaic_0001>

<bundles_post_ra>
// kernel: gru_cell.1
= control target key start
LH: loop header
LB: loop body
LE: loop exit
PB: predicated region body
PF: predicated region fallthrough
CT: control target
= control target key end

     0   :  { %v309_v3 = vmov 0.0|0.0   ;;  %vm310_vm0 = vmmov 0   ;;  %v311_v9 = vmov 0.0   ;;  %s385_s0 = inlined_call_operand.vmem [shape: f32[2,16], index: 0, kind: input, shape index: {}]   ;;  %s386_s1 = inlined_call_operand.vmem [shape: f32[2,32], index: 1, kind: input, shape index: {}]   ;;  %s387_s2 = inlined_call_operand.vmem [shape: f32[16,96], index: 2, kind: input, shape index: {}]   ;;  %s388_s3 = inlined_call_operand.vmem [shape: f32[32,96], index: 3, kind: input, shape index: {}]   ;;  %s389_s4 = inlined_call_operand.vmem [shape: f32[1,96], index: 4, kind: input, shape index: {}]   ;;  %s390_s5 = inlined_call_operand.hbm [shape: f32[2,32], index: 5, kind: output, shape index: {}]  }
   0x1   :  { %v99_v0 = vld [vmem:[%s388_s3] sm:$0xff]  ;;  %v100_v1 = vld [vmem:[%s388_s3 + $0x8] sm:$0xff]  ;;  %v101_v2 = vld [vmem:[%s388_s3 + $0x10] sm:$0xff]  ;;  %266 = vmatprep.subr.bf16.mxu1 %v309_v3  ;;  %263 = vmatprep.subr.bf16.mxu0 %v309_v3 }
   0x2   :  { %v267_v4 = vpack.c.bf16 %v100_v1, %v99_v0  ;;  %v102_v5 = vld [vmem:[%s388_s3 + $0x18] sm:$0xff]  ;;  %v23_v6 = vld [vmem:[%s387_s2] sm:$0xff]  ;;  %v24_v7 = vld [vmem:[%s387_s2 + $0x8] sm:$0xff]  ;;  %260 = vmatprep.mubr.msk.f32.mxu1 %vm310_vm0, %v311_v9  ;;  %249 = vmatprep.mubr.msk.f32.mxu0 %vm310_vm0, %v311_v9 }
   0x3   :  { %v264_v8 = vpack.c.bf16 %v24_v7, %v23_v6  ;;  %v270_v10 = vpack.c.bf16 %v102_v5, %v101_v2 }
   0x4   :  { %268 = vmatpush3.bf16.msra.mxu1 %v267_v4 }
   0x5   :  { %10 = vsyncpa [#allocation3], 0  ;;  %269 = vmatprep.subr.bf16.mxu1 %v309_v3  ;;  %265 = vmatpush3.bf16.msra.mxu0 %v264_v8  ;;  %v21_v11 = vld [vmem:[%s385_s0] sm:$0x3]  ;;  %vm25_vm1 = vcmask 130048   ;;  %vm110_vm2 = vcmask 261120  }
   0x6   :  { %v22_v12 = vld [vmem:[%s386_s1] sm:$0x3]  ;;  %s312_s0 = smov 64   ;;  %s313_s1 = smov 96   ;;  %vm217_vm3 = vcmask 254976  }
   0x7   :  { %v234_v14 = vld [vmem:[%s389_s4] ss:$0 sm:$0xff]  ;;  %s314_s4 = smov 32   ;;  %s315_s9 = smov [#allocation2]  }
   0x8   :  { %271 = vmatpush3.bf16.msra.mxu1 %v270_v10  ;;  %250 = vmatmul.mubr.msk.f32.vlgmr.msra.gmra.mrb[0].mxu0 %vm25_vm1, %v21_v11  ;;  %s225_s10 = sshll.u32 %s315_s9, 4  ;;  %s226_s10 = int_to_ptr.vmem [resolvable:$true] %s225_s10 }
   0x9   :  { %s285_s11 = scalar_lea.vmem %s226_s10, 32  ;;  %p290_p1 = scmp.lt.s32.totalorder %s226_s10, %s226_s10 }
   0xa   :  { %p286_p0 = scmp.ne.s32.totalorder %s226_s10, %s285_s11  ;;  %p291_p2 = scmp.lt.s32.totalorder %s285_s11, %s285_s11 }
   0xb   :  { %261 = vmatmul.mubr.msk.f32.vlgmr.msra.gmra.mrb[0].mxu1 %vm110_vm2, %v22_v12 }
   0xc   :  { %p292_p3 = por %p291_p2, %p290_p1 }
   0xe   :  { %p293_p4 = pnand %p292_p3, %p286_p0 }
  0xdb   :  { %v95_v13 = vpop.f32.mrb[0].mxu0 }
  0xdc   :  { %v251_v15 = vpop.f32.mrb[1].mxu0 }
  0xde   :  { %v180_v16 = vpop.f32.mrb[0].mxu1 }
  0xdf   :  { %v181_v17 = vadd.f32 %v234_v14, %v180_v16  ;;  %v262_v18 = vpop.f32.mrb[1].mxu1 }
  0xe1   :  { %v184_v19 = vadd.f32 %v181_v17, %v95_v13  ;;  %192 = vrot.lane.b32.xlu0 %v181_v17, %s312_s0 }
  0xe3   :  { %v236_v20 = vmul.f32 -1.442695, %v184_v19 }
  0xe5   :  { %279 = vpow2.f32 %v236_v20 }
  0xef   :  { %v280_v21 = vpop.eup %279 }
  0xf0   :  { %v188_v22 = vadd.f32 1.0, %v280_v21 }
  0xf2   :  { %281 = vrcp.f32 %v188_v22 }
  0xfc   :  { %v282_v23 = vpop.eup %281 }
  0xfd   :  { %v202_v30 = vsub.f32 1.0, %v282_v23 }
 0x153   :  { %v193_v24 = vpop.permute.xlu0 %192 }
 0x154   :  { %v195_v25 = vmul.f32 %v282_v23, %v193_v24 }
 0x156   :  { %197 = vrot.lane.b32.xlu0 %v195_v25, %s312_s0 }
 0x1c8   :  { %v198_v26 = vpop.permute.xlu0 %197 }
 0x1c9   :  { %v200_v27 = vadd.f32 %v198_v26, %v95_v13 }
 0x1cb   :  { %283 = vtanh.f32 %v200_v27 }
 0x1d5   :  { %v284_v28 = vpop.eup %283 }
 0x1d6   :  { %204 = vrot.lane.b32.xlu1 %v284_v28, %s313_s1 }
 0x1da   :  { %208 = vrot.lane.b32.xlu1 %v22_v12, %s314_s4 }
 0x248   :  { %v205_v29 = vpop.permute.xlu1 %204 }
 0x249   :  { %v207_v32 = vmul.f32 %v205_v29, %v202_v30 }
 0x24c   :  { %v209_v31 = vpop.permute.xlu1 %208 }
 0x24d   :  { %v211_v33 = vmul.f32 %v282_v23, %v209_v31 }
 0x24f   :  { %v212_v34 = vadd.f32 %v211_v33, %v207_v32 }
 0x251   :  { %214 = vrot.lane.b32.xlu0 %v212_v34, %s313_s1 }
 0x2c3   :  { %v215_v35 = vpop.permute.xlu0 %214 }
 0x2c4   :  { %218 = vst.msk [vmem:[#allocation2] sm:$0x3] %vm217_vm3, %v215_v35 }
 0x2c5   :  { %296 = shalt.err (!%p293_p4)
}
 0x2c6   :  { %s297_s14 = scalar_lea.hbm %s390_s5, 32 }
 0x2c7   :  { %p298_p5 = scmp.ne.s32.totalorder %s390_s5, %s297_s14  ;;  %p301_p6 = scmp.lt.u32.totalorder %s297_s14, %s390_s5 }
 0x2c9   :  { %p303_p7 = pnand %p301_p6, %p298_p5 }
 0x2cb   :  { %306 = shalt.err (!%p303_p7)
}
 0x2cc   :  { %228 = dma.vmem_to_hbm [thread:$0]  %s226_s10, 32, %s390_s5, [#allocation3]  }
 0x2cd   :  { %307 = dma.done.wait [#allocation3], 32  }
 0x2ce   :  { %308 = vsyncadd [#allocation3], 4294967264 }
 0x2cf   :  { %232 = vsyncpa [#allocation3], 1 }

</bundles_post_ra>
